<compile_context>
chip_gen: v5e
topology: v5e:2x2
jax: 0.10.0
libtpu: 0.0.40
codegen_flags: <defaults>
</compile_context>

<pallas_src>
import functools

import jax
import jax.numpy as jnp
import numpy as np
from jax import lax
from jax.experimental import pallas as pl
from jax.experimental.pallas import tpu as pltpu

KERNEL_SET = (2, 3, 5, 7)
DILATION = 2
MXU_DTYPE = jnp.bfloat16      # MXU input dtype; accumulation stays f32


def _tconv_kernel(x_ref, w_ref, b_ref, out_ref, *, half_cols):
    # x_ref  : (tile_m, T*Cin)         bf16, one channels-last series per row
    # w_ref  : (T*Cin, 2*T_out*Cout)   bf16 Toeplitz-packed [filter | gate]
    # b_ref  : (1, 2*T_out*Cout)       f32 biases (tiled over t)
    # out_ref: (tile_m, T_out*Cout)    lane-dense gated output
    acc = jnp.dot(x_ref[...], w_ref[...],
                  preferred_element_type=jnp.float32)      # (tile_m, 2*half)
    acc = acc + b_ref[...]                                  # f32 bias add
    gated = jnp.tanh(acc[:, :half_cols]) * jax.nn.sigmoid(acc[:, half_cols:])
    out_ref[...] = gated.astype(out_ref.dtype)


def _pack_params(filter_w, filter_b, gate_w, gate_b, cin, t_len, t_out):
    """Pack both inception blocks into one Toeplitz weight / bias pair.

    Weight row index  = tau*cin + c   (tau = input time step within a series)
    Weight col index  = half*t_out*cout + t*cout + o   (t = output time step)
    The per-branch crop to the last t_out steps is baked in: branch k's tap j
    for output step t reads input step  t + DILATION*(kmax - k + j).
    """
    kmax = KERNEL_SET[-1]
    cout = sum(int(w.shape[0]) for w in filter_w)
    W = np.zeros((t_len * cin, 2 * t_out * cout), np.float32)
    B = np.zeros((1, 2 * t_out * cout), np.float32)
    for half, (ws, bs) in enumerate(((filter_w, filter_b), (gate_w, gate_b))):
        base = half * t_out * cout
        ch = 0
        for k, w, b in zip(KERNEL_SET, ws, bs):
            ck = int(w.shape[0])
            w_np = np.asarray(w)[:, :, 0, :]          # (ck, cin, k)
            b_np = np.asarray(b)
            for t in range(t_out):
                col0 = base + t * cout + ch
                B[0, col0:col0 + ck] = b_np
                for j in range(k):
                    tau = t + DILATION * (kmax - k + j)
                    W[tau * cin:(tau + 1) * cin, col0:col0 + ck] = w_np[:, :, j].T
            ch += ck
    return jnp.asarray(W, MXU_DTYPE), jnp.asarray(B, jnp.float32)


def _padded_vmem_bytes(rows, cols, itemsize):
    """VMEM footprint of a (rows, cols) block including (8,128) tile padding."""
    lanes = pl.cdiv(cols, 128) * 128
    pack = max(1, 4 // itemsize)                    # rows packed per sublane
    padded_rows = pl.cdiv(rows, 8 * pack) * 8 * pack
    return padded_rows * lanes * itemsize


def _step_footprint(tile_m, k_cols, out_cols):
    """Padded per-step VMEM: double-buffered input/output + resident w, b."""
    return (2 * _padded_vmem_bytes(tile_m, k_cols, 2)
            + 2 * _padded_vmem_bytes(tile_m, out_cols, 4)
            + _padded_vmem_bytes(k_cols, 2 * out_cols, 2)
            + _padded_vmem_bytes(1, 2 * out_cols, 4))


def _choose_tile_m(m, k_cols, out_cols):
    """Series per grid step: multiple of 8, ~<=512, lane-padding-aware VMEM
    budget, and >= 8 grid steps when the problem is large enough (keeps the
    DMA/compute pipeline deep and both v7x TensorCores busy)."""
    if m <= 8:
        return m                                    # full-array block is legal
    tile = max(8, min(512, m) // 8 * 8)
    budget = 12 * 2**20                             # headroom vs v7x 64 MiB VMEM
    while tile > 8 and _step_footprint(tile, k_cols, out_cols) > budget:
        tile -= 8
    while tile > 8 and pl.cdiv(m, tile) < 8:
        tile -= 8
    return tile


def tconv_forward(x_nchw, filter_w, filter_b, gate_w, gate_b):
    """TConv.forward(x, is_filter=True) in eval mode (dropout = identity).

    x_nchw: (B, Cin, N, T); *_w[i]: torch layout (Ck, Cin, 1, k_i); *_b[i]: (Ck,).
    Returns (B, Cout, N, T_out) with T_out = T - DILATION*(max(KERNEL_SET)-1).
    """
    bsz, cin, n_nodes, t_len = x_nchw.shape
    kmax = KERNEL_SET[-1]
    t_out = t_len - DILATION * (kmax - 1)
    assert t_out > 0, "time dimension too short for the largest dilated kernel"
    cout = sum(int(w.shape[0]) for w in filter_w)

    w_packed, b_packed = _pack_params(filter_w, filter_b, gate_w, gate_b,
                                      cin, t_len, t_out)
    k_cols = t_len * cin
    out_cols = t_out * cout
    m = bsz * n_nodes

    # NCHW -> one channels-last series per row; cast to bf16 once so the
    # HBM->VMEM DMA moves half the bytes and the kernel does no casts.
    x_rows = jnp.transpose(x_nchw, (0, 2, 3, 1)).reshape(m, k_cols)
    x_rows = x_rows.astype(MXU_DTYPE)

    tile_m = _choose_tile_m(m, k_cols, out_cols)
    grid_m = pl.cdiv(m, tile_m)
    m_pad = grid_m * tile_m
    if m_pad != m:
        x_rows = jnp.pad(x_rows, ((0, m_pad - m), (0, 0)))

    est = _step_footprint(tile_m, k_cols, out_cols)
    vmem_limit = int(min(64 << 20, max(32 << 20, 2 * est)))

    kernel = functools.partial(_tconv_kernel, half_cols=out_cols)
    out_rows = pl.pallas_call(
        kernel,
        out_shape=jax.ShapeDtypeStruct((m_pad, out_cols), x_nchw.dtype),
        grid=(grid_m,),
        in_specs=[
            pl.BlockSpec((tile_m, k_cols), lambda i: (i, 0)),
            pl.BlockSpec(w_packed.shape, lambda i: (0, 0)),   # resident weights
            pl.BlockSpec(b_packed.shape, lambda i: (0, 0)),   # resident biases
        ],
        out_specs=pl.BlockSpec((tile_m, out_cols), lambda i: (i, 0)),
        compiler_params=pltpu.CompilerParams(
            dimension_semantics=("parallel",),     # shards across v7x's 2 TCs
            vmem_limit_bytes=vmem_limit),
    )(x_rows, w_packed, b_packed)

    # (M, T_out*Cout) -> NCHW glue (pure reshape + one transpose; no crop copy).
    out = out_rows[:m].reshape(bsz, n_nodes, t_out, cout)
    return jnp.transpose(out, (0, 3, 1, 2))


# ---------------- pure-JAX reference (mirrors the PyTorch forward) ----------
def _ref_inception(x, ws, bs):
    outs = []
    for w, b in zip(ws, bs):
        y = lax.conv_general_dilated(
            x, w, window_strides=(1, 1), padding="VALID",
            rhs_dilation=(1, DILATION),
            dimension_numbers=("NCHW", "OIHW", "NCHW"))
        outs.append(y + b.reshape(1, -1, 1, 1))
    t_out = outs[-1].shape[-1]
    return jnp.concatenate([y[..., -t_out:] for y in outs], axis=1)


def ref_tconv(x, filter_w, filter_b, gate_w, gate_b):
    f = jnp.tanh(_ref_inception(x, filter_w, filter_b))
    g = jax.nn.sigmoid(_ref_inception(x, gate_w, gate_b))
    return f * g


if __name__ == "__main__":
    # Small shapes consistent with the module: B=2, residual_channels=4,
    # N=8 nodes, T=16, conv_channels=8 (=> 2 output channels per branch).
    bsz, cin, n_nodes, t_len = 2, 4, 8, 16
    conv_channels = 8
    ck = conv_channels // len(KERNEL_SET)

    key = jax.random.PRNGKey(0)
    key, xk = jax.random.split(key)
    x = jax.random.normal(xk, (bsz, cin, n_nodes, t_len), dtype=jnp.float32)

    def make_params(key):
        ws, bs = [], []
        for k in KERNEL_SET:
            key, wk, bk = jax.random.split(key, 3)
            ws.append(jax.random.normal(wk, (ck, cin, 1, k), jnp.float32) * 0.1)
            bs.append(jax.random.normal(bk, (ck,), jnp.float32) * 0.1)
        return key, ws, bs

    key, filter_w, filter_b = make_params(key)
    key, gate_w, gate_b = make_params(key)

    out = tconv_forward(x, filter_w, filter_b, gate_w, gate_b)
    out = jax.block_until_ready(out)

    ref = ref_tconv(x, filter_w, filter_b, gate_w, gate_b)
    t_out = t_len - DILATION * (KERNEL_SET[-1] - 1)
    assert out.shape == (bsz, conv_channels, n_nodes, t_out)
    # bf16 MXU inputs (f32 accumulation) -> loosened tolerance vs f32 reference.
    np.testing.assert_allclose(np.asarray(out), np.asarray(ref),
                               rtol=3e-2, atol=3e-2)
    print("KERNEL_OK")
</pallas_src>

<mosaic_0001>
module attributes {stable_mosaic.version = 11 : i64} {
  func.func @_tconv_kernel(%arg0: i32, %arg1: memref<8x64xbf16, #tpu.memory_space<vmem>>, %arg2: memref<64x64xbf16, #tpu.memory_space<vmem>>, %arg3: memref<1x64xf32, #tpu.memory_space<vmem>>, %arg4: memref<8x32xf32, #tpu.memory_space<vmem>>) attributes {dimension_semantics = [#tpu.dimension_semantics<parallel>], iteration_bounds = array<i64: 2>, scalar_prefetch = 0 : i64, scratch_operands = 0 : i64, tpu.core_type = #tpu.core_type<tc>, window_params = [{transform_indices = @transform_0, window_bounds = array<i64: 8, 64>}, {pipeline_mode = #tpu.pipeline_mode<synchronous>, transform_indices = @transform_1, window_bounds = array<i64: 64, 64>}, {pipeline_mode = #tpu.pipeline_mode<synchronous>, transform_indices = @transform_2, window_bounds = array<i64: 1, 64>}, {transform_indices = @transform_3, window_bounds = array<i64: 8, 32>}]} {
    %c0 = arith.constant 0 : index
    %c0_0 = arith.constant 0 : index
    %0 = vector.load %arg1[%c0, %c0_0] : memref<8x64xbf16, #tpu.memory_space<vmem>>, vector<8x64xbf16>
    %c0_1 = arith.constant 0 : index
    %c0_2 = arith.constant 0 : index
    %1 = vector.load %arg2[%c0_1, %c0_2] : memref<64x64xbf16, #tpu.memory_space<vmem>>, vector<64x64xbf16>
    %cst = arith.constant dense<0.000000e+00> : vector<8x64xf32>
    %2 = tpu.matmul %0, %1, %cst {dimension_numbers = #tpu.dot_dimension_numbers<[1], [0], [0], [1], [0, 0, 1, 1], [], []>} : vector<8x64xbf16>, vector<64x64xbf16>, vector<8x64xf32> -> vector<8x64xf32>
    %c0_3 = arith.constant 0 : index
    %c0_4 = arith.constant 0 : index
    %3 = vector.load %arg3[%c0_3, %c0_4] : memref<1x64xf32, #tpu.memory_space<vmem>>, vector<1x64xf32>
    %4 = vector.broadcast %3 : vector<1x64xf32> to vector<8x64xf32>
    %5 = arith.addf %2, %4 : vector<8x64xf32>
    %6 = vector.extract_strided_slice %5 {offsets = [0, 0], sizes = [8, 32], strides = [1, 1]} : vector<8x64xf32> to vector<8x32xf32>
    %7 = math.tanh %6 : vector<8x32xf32>
    %8 = vector.extract_strided_slice %5 {offsets = [0, 32], sizes = [8, 32], strides = [1, 1]} : vector<8x64xf32> to vector<8x32xf32>
    %9 = arith.negf %8 : vector<8x32xf32>
    %10 = math.exp %9 : vector<8x32xf32>
    %cst_5 = arith.constant 1.000000e+00 : f32
    %11 = vector.broadcast %cst_5 : f32 to vector<8x32xf32>
    %12 = arith.addf %11, %10 : vector<8x32xf32>
    %13 = arith.divf %11, %12 : vector<8x32xf32>
    %14 = arith.mulf %7, %13 : vector<8x32xf32>
    %c0_6 = arith.constant 0 : index
    %c0_7 = arith.constant 0 : index
    %15 = vector.load %arg4[%c0_6, %c0_7] : memref<8x32xf32, #tpu.memory_space<vmem>>, vector<8x32xf32>
    tpu.vector_store %arg4[%c0_6, %c0_7], %14 {strides = array<i32>} : memref<8x32xf32, #tpu.memory_space<vmem>>, vector<8x32xf32>,
    return
  }
  func.func @transform_0(%arg0: i32) -> (i32, i32) {
    %c0_i32 = arith.constant 0 : i32
    %c0_i32_0 = arith.constant 0 : i32
    return %arg0, %c0_i32 : i32, i32
  }
  func.func @transform_1(%arg0: i32) -> (i32, i32) {
    %c0_i32 = arith.constant 0 : i32
    %c0_i32_0 = arith.constant 0 : i32
    %c0_i32_1 = arith.constant 0 : i32
    return %c0_i32, %c0_i32_0 : i32, i32
  }
  func.func @transform_2(%arg0: i32) -> (i32, i32) {
    %c0_i32 = arith.constant 0 : i32
    %c0_i32_0 = arith.constant 0 : i32
    %c0_i32_1 = arith.constant 0 : i32
    return %c0_i32, %c0_i32_0 : i32, i32
  }
  func.func @transform_3(%arg0: i32) -> (i32, i32) {
    %c0_i32 = arith.constant 0 : i32
    %c0_i32_0 = arith.constant 0 : i32
    return %arg0, %c0_i32 : i32, i32
  }
}

</mosaic_0001>

<bundles_post_ra>
// kernel: tpu_custom_call.1
= control target key start
LH: loop header
LB: loop body
LE: loop exit
PB: predicated region body
PF: predicated region fallthrough
CT: control target
= control target key end

     0   :  { %8 = vsyncpa [#allocation3], 0  ;;  %s782_s0 = inlined_call_operand.hbm [shape: bf16[16,64], index: 0, kind: input, shape index: {}]   ;;  %s783_s1 = inlined_call_operand.hbm [shape: bf16[64,64], index: 1, kind: input, shape index: {}]   ;;  %s784_s2 = inlined_call_operand.vmem [shape: f32[1,64], index: 2, kind: input, shape index: {}]   ;;  %s785_s3 = inlined_call_operand.hbm [shape: f32[16,32], index: 3, kind: output, shape index: {}]  }
   0x1   :  { %10 = vsyncpa [#allocation3 + $0x1], 0 }
   0x2   :  { %11 = vsyncpa [#allocation6], 0 }
   0x3   :  { %12 = vsyncpa [#allocation4], 0 }
   0x4   :  { %14 = vsyncpa [#allocation4 + $0x1], 0  ;;  %s642_s12 = smov 0   ;;  %s644_s13 = smov 0  }
   0x5   :  { %s646_s14 = smov 0   ;;  %s648_s15 = smov 0  }
   0x6 LB: > { %s130_s18 = sshll.u32 %s783_s1, 4  ;;  %s666_s19 = sadd.s32 4294967295, %s616_s15   ;;  %s616_s15 = sphi %s648_s15, %s795_s15   ;;  %s612_s14 = sphi %s646_s14, %s794_s14   ;;  %s608_s13 = sphi %s644_s13, %s793_s13   ;;  %s604_s12 = sphi %s642_s12, %s792_s12   ;;  %s131_s18 = int_to_ptr.hbm [resolvable:$true] %s130_s18 }
   0x7   : > { %p384_p0 = scmp.ge.s32.totalorder %s616_s15, 1  ;;  %p41_p1 = scmp.eq.s32.totalorder %s666_s19, 0 }
   0x8   : > { %p119_p2 = scmp.lt.s32.totalorder %s616_s15, 3  ;;  %s618_s21 = smov [#allocation5]  }
   0x9   : > { %s132_s22 = sshll.u32 %s618_s21, 4  ;;  %s619_s23 = smov 64   ;;  %s133_s22 = int_to_ptr.vmem [resolvable:$true] %s132_s22 }
   0xa   : > { %p671_p3 = pnand %p384_p0, %p119_p2  ;;  %s620_s24 = smov 4  }
   0xb   : > { %s383_s25 = sadd.s32 4294967294, %s616_s15   ;;  %s682_s26 = sadd.s32 1, %s616_s15  }
   0xc   : > { %p427_p4 = pneg %p671_p3  ;;  %s27_s27 = sadd.s32 1, %s612_s14 }
   0xd   : > { %s24_s28 = ssub.s32 %s616_s15, %s682_s26  ;;  %p34_p7 = scmp.ne.s32.totalorder %s612_s14, %s608_s13 }
   0xe   : > { %p428_p6 = pnand %p427_p4, %p41_p1  ;;  %p25_p8 = scmp.eq.s32.totalorder %s24_s28, 0 }
   0xf   : > { %p35_p9 = scmp.eq.s32.totalorder %s616_s15, 0  ;;  %p40_p10 = scmp.ne.s32.totalorder %s608_s13, %s604_s12 }
  0x10   : > { %430 = dma.hbm_to_vmem [thread:$0]  (!%p428_p6), %s131_s18, 512, %s133_s22, [#allocation6], %s619_s23, %s619_s23, %s620_s24  }
  0x11   : > { %p106_p11 = scmp.eq.s32.totalorder %s666_s19, 1  ;;  %p698_p12 = por %p41_p1, %p40_p10 }
  0x12   : > { %s694_s29 = scalar_select %p25_p8, %s612_s14, %s27_s27  }
  0x13   : > { %p702_p13 = por %p106_p11, %p34_p7  ;;  %p112_p0 = scmp.eq.s32.totalorder %s383_s25, 1 }
  0x14   : > { %p36_p2 = por %p35_p9, %p34_p7  ;;  %s149_s5 = sand.u32 1, %s612_s14  }
  0x15   : > { %p707_p4 = por %p112_p0, %p40_p10  ;;  %p440_p6 = scmp.lt.s32.totalorder %s616_s15, 2 }
  0x16   : > { %s387_s7 = sshll.u32 %s149_s5, 2  ;;  %s388_s8 = sshll.u32 %s616_s15, 2 }
  0x17   : > { %s157_s11 = scalar_lea.hbm %s782_s0, %s388_s8  ;;  %s153_s17 = scalar_lea.vmem [#allocation2], %s387_s7 }
  0x18   : > { %s159_s16 = sshll.u32 %s157_s11, 4  ;;  %s161_s18 = sshll.u32 %s153_s17, 4  ;;  %s160_s16 = int_to_ptr.hbm [resolvable:$true] %s159_s16  ;;  %s162_s18 = int_to_ptr.vmem [resolvable:$true] %s161_s18 }
  0x19   : > { %p716_p8 = pnand %p440_p6, %p36_p2  ;;  %s150_s22 = scalar_lea.sflag [#allocation3], %s149_s5 }
  0x1a   : > { %s516_s23 = sshra.s32 %s160_s16, 4  ;;  %s523_s28 = scalar_lea.hbm %s782_s0, 8  ;;  %s517_s23 = int_to_ptr.hbm [resolvable:$true] %s516_s23 }
  0x1b   : > { %s518_s24 = scalar_lea.hbm %s517_s23, 4  ;;  %p520_p9 = pneg %p716_p8 }
  0x1c   : > { %p519_p7 = scmp.ne.s32.totalorder %s517_s23, %s518_s24  ;;  %p524_p0 = scmp.lt.s32.totalorder %s517_s23, %s782_s0 }
  0x1d   : > { %p525_p2 = scmp.lt.s32.totalorder %s523_s28, %s518_s24 }
  0x1e   : > { %p521_p10 = pnand %p520_p9, %p519_p7 }
  0x1f   : > { %p526_p6 = por %p525_p2, %p524_p0 }
  0x20   : > { %p522_p11 = pneg %p521_p10 }
  0x22   : > { %p527_p5 = pnand %p526_p6, %p522_p11 }
  0x24   : > { %530 = shalt.err (!%p527_p5)
}
  0x25   : > { %434 = dma.hbm_to_vmem [thread:$0]  (!%p716_p8), %s160_s16, 64, %s162_s18, %s150_s22  }
  0x26   : > { %170 = sbr.rel (%p671_p3) target bundleno = 338 (0x152), region = 32  ;;  %s733_s5 = sand.u32 (!%p671_p3), 1, %s608_s13  }
  0x27   : > { %s390_s9 = sshll.u32 (!%p671_p3), %s733_s5, 2  ;;  %s173_s10 = scalar_lea.sflag (!%p671_p3), [#allocation3], %s733_s5 }
  0x28   : > { %s176_s11 = scalar_lea.vmem (!%p671_p3), [#allocation2], %s390_s9 }
  0x2b   : > { %591 = dma.done.wait (%p698_p12), %s173_s10, 64  }
  0x2c   : > { %593 = vsyncadd (%p698_p12), %s173_s10, 4294967232 }
  0x2d   : > { %595 = dma.done.wait (%p41_p1), [#allocation6], 512  }
  0x2e   : > { %597 = vsyncadd (%p41_p1), [#allocation6], 4294966784  ;;  %v418_v0 = vld [vmem:[#allocation5 + $0x18] sm:$0xff]  ;;  %v417_v1 = vld [vmem:[#allocation5 + $0x10] sm:$0xff]  ;;  %vm243_vm0 = vcmask 523264   ;;  %s621_s16 = smov 96  }
  0x2f   : > { %251 = vmatpush.bf16.msra.mxu0 %v418_v0  ;;  %v416_v2 = vld [vmem:[#allocation5 + $0x8] sm:$0xff]  ;;  %v415_v3 = vld [vmem:[#allocation5] sm:$0xff]  ;;  %v206_v4 = vld [vmem:[%s176_s11] sm:$0xf]  ;;  %s392_s17 = sshll.u32 %s733_s5, 3  ;;  %s412_s18 = sshll.u32 %s666_s19, 3 }
  0x30   : > { %v479_v5 = vld [vmem:[%s784_s2] ss:$0 sm:$0xff]  ;;  %s298_s23 = scalar_lea.hbm %s785_s3, %s412_s18  ;;  %s204_s24 = scalar_lea.vmem [#allocation7], %s392_s17  ;;  %vm285_vm5 = vcmask 261120  }
  0x31   : > { %s300_s25 = sshll.u32 %s204_s24, 4  ;;  %s302_s27 = sshll.u32 %s298_s23, 4  ;;  %s301_s25 = int_to_ptr.vmem [resolvable:$true] %s300_s25  ;;  %s303_s27 = int_to_ptr.hbm [resolvable:$true] %s302_s27 }
  0x32   : > { %s288_s28 = scalar_lea.sflag [#allocation4], %s733_s5  ;;  %s560_s7 = sshra.s32 %s303_s27, 4  ;;  %s561_s7 = int_to_ptr.hbm [resolvable:$true] %s560_s7 }
  0x33   : > { %252 = vmatpush.bf16.msra.mxu0 %v417_v1  ;;  %s562_s19 = scalar_lea.hbm %s561_s7, 8  ;;  %s566_s10 = scalar_lea.hbm %s785_s3, 16 }
  0x34   : > { %p563_p1 = scmp.ne.s32.totalorder %s561_s7, %s562_s19  ;;  %p567_p12 = scmp.lt.s32.totalorder %s561_s7, %s785_s3 }
  0x35   : > { %p568_p8 = scmp.lt.s32.totalorder %s566_s10, %s562_s19 }
  0x36   : > { %p564_p3 = pnand %p563_p1, %p702_p13 }
  0x37   : > { %253 = vmatpush.bf16.msra.mxu0 %v416_v2  ;;  %p569_p7 = por %p568_p8, %p567_p12 }
  0x38   : > { %p565_p5 = pneg %p564_p3 }
  0x3a   : > { %p570_p9 = pnand %p569_p7, %p565_p5 }
  0x3b   : > { %254 = vmatpush.bf16.msra.mxu0 %v415_v3 }
  0x3e   : > { %409 = vmatmul.msk.bf16.vlgmr.msra.gmra.mxu0 %vm243_vm0, %v206_v4 }
  0xbb   : > { %v256_v6 = vpop.f32.mrf.mxu0 }
  0xbc   : > { %v257_v7 = vadd.f32 %v479_v5, %v256_v6 }
  0xbe   : > { %v410_v8 = vmul.f32 -1.442695, %v257_v7 }
  0xc0   : > { %480 = vpow2.f32 %v410_v8 }
  0xc3   : > { %v258_v9 = vpop.f32.mrf.mxu0 }
  0xc6   : > { %v481_v10 = vpop.eup %480 }
  0xc7   : > { %v264_v11 = vadd.f32 1.0, %v481_v10 }
  0xc9   : > { %482 = vrcp.f32 %v264_v11  ;;  %v276_v15 = vand.u32 2147483648, %v264_v11  ;;  %v274_v17 = vand.u32 2147483647, %v264_v11  ;;  %vm270_vm2 = vweird.f32 %v264_v11 }
  0xca   : > { %484 = vtanh.f32 %v257_v7 }
  0xcb   : > { %v277_v19 = vor.u32 1.1754944e-38, %v276_v15  ;;  %vm275_vm4 = vcmp.eq.f32.partialorder %v274_v17, 8.507059e+37 }
  0xcf   : > { %v483_v12 = vpop.eup %482 }
  0xd0   : > { %v266_v13 = vmul.f32 %v483_v12, %v264_v11  ;;  %vm271_vm1 = vweird.f32 %v483_v12  ;;  %v485_v22 = vpop.eup %484 }
  0xd1   : > { %vm272_vm3 = vmor %vm270_vm2, %vm271_vm1 }
  0xd2   : > { %v267_v14 = vsub.f32 1.0, %v266_v13 }
  0xd4   : > { %v268_v16 = vmul.f32 %v483_v12, %v267_v14 }
  0xd6   : > { %v269_v18 = vadd.f32 %v483_v12, %v268_v16 }
  0xd8   : > { %v273_v20 = vsel %vm272_vm3, %v483_v12, %v269_v18 }
  0xd9   : > { %v278_v21 = vsel %vm275_vm4, %v277_v19, %v273_v20 }
  0xda   : > { %281 = vrot.lane.b32.xlu0 %v278_v21, %s621_s16 }
 0x14c   : > { %v282_v23 = vpop.permute.xlu0 %281 }
 0x14d   : > { %v284_v24 = vmul.f32 %v485_v22, %v282_v23 }
 0x14f   : > { %286 = vst.msk [vmem:[%s204_s24] sm:$0xff] %vm285_vm5, %v284_v24 }
 0x150   : > { %573 = shalt.err (!%p570_p9)
}
 0x151   : > { %425 = dma.vmem_to_hbm [thread:$0]  (%p702_p13), %s301_s25, 128, %s303_s27, %s288_s28  }
 0x152 PF: > { %s314_s5 = sand.u32 1, %s604_s12   ;;  %p791_p10 = scmp.ge.s32.totalorder %s616_s15, 2 }
 0x153   : > { %s315_s30 = scalar_lea.sflag [#allocation4], %s314_s5 }
 0x154   : > { %p436_p11 = pnand %p791_p10, %p707_p4 }
 0x156   : > { %p437_p0 = pneg %p436_p11 }
 0x158   : > { %599 = dma.done.wait (%p437_p0), %s315_s30, 128  }
 0x159   : > { %601 = vsyncadd (%p437_p0), %s315_s30, 4294967168  ;;  %p17_p2 = scmp.ge.s32.totalorder %s682_s26, 4   ;;  %s792_s12 = smov %s608_s13 }
 0x15a   : > { %s793_s13 = smov %s612_s14  ;;  %s794_s14 = smov %s694_s29 }
 0x15b   : > { %s795_s15 = smov %s682_s26  ;;  %19 = sbr.rel (!%p17_p2) target bundleno = 6 (0x6), region = 81 }
 0x160   :  { %321 = vsyncpa [#allocation3], 1 }
 0x161   :  { %323 = vsyncpa [#allocation3 + $0x1], 1 }
 0x162   :  { %324 = vsyncpa [#allocation6], 1 }
 0x163   :  { %325 = vsyncpa [#allocation4], 1 }
 0x164   :  { %327 = vsyncpa [#allocation4 + $0x1], 1 }

</bundles_post_ra>
